<compile_context>
chip_gen: v6e
topology: v6e:2x2x1
jax: 0.10.0
libtpu: 0.0.40
codegen_flags: <defaults>
</compile_context>

<pallas_src>
import functools

import jax
import jax.numpy as jnp
from jax.experimental import pallas as pl
from jax.experimental.pallas import tpu as pltpu

LANE = 128  # lane width: channel / node padding granularity


def _round_up(x, m):
    return ((x + m - 1) // m) * m


def _divisor_tiles(n, candidates):
    opts = [c for c in candidates if c <= n and n % c == 0]
    return opts if opts else [n]


def _vmem_limit_bytes():
    """Scoped-VMEM limit derived from physical VMEM (v5e/v6e 128 MiB, v7x 64 MiB)."""
    try:
        info = pltpu.get_tpu_info()
        cap = getattr(info, "vmem_capacity_bytes", None)
        if cap:
            return int(cap) * 3 // 4
    except Exception:
        pass
    return 48 * 1024 * 1024  # conservative fallback: fits v7x's 64 MiB VMEM


# --------------------------------------------------------------------------
# Fused layer kernel:  O = A_hat @ (X @ W) + b
#   grid = (row tiles, K tiles); X and W are VMEM-resident (loaded once),
#   A_hat tiles are streamed, H K-slab recomputed in-kernel (MXU has slack:
#   the kernel is HBM-bound by the A stream).
# --------------------------------------------------------------------------
def _fused_layer_kernel(a_ref, x_ref, w_ref, b_ref, o_ref, acc_ref, *, tk,
                        apply_relu):
    k = pl.program_id(1)

    @pl.when(k == 0)
    def _():
        acc_ref[...] = jnp.zeros_like(acc_ref)

    start = pl.multiple_of(k * tk, tk)
    x_slab = x_ref[pl.ds(start, tk), :]
    h_slab = jnp.dot(x_slab, w_ref[...],
                     preferred_element_type=jnp.float32).astype(jnp.bfloat16)
    acc_ref[...] += jnp.dot(a_ref[...], h_slab,
                            preferred_element_type=jnp.float32)

    @pl.when(k == pl.num_programs(1) - 1)
    def _():
        out = acc_ref[...] + b_ref[...]
        if apply_relu:
            out = jnp.maximum(out, 0.0)
        o_ref[...] = out.astype(o_ref.dtype)


def fused_layer(a_bf16, x_bf16, w_bf16, b_f32, *, apply_relu, out_dtype,
                tm, tk, vmem_limit):
    n = a_bf16.shape[0]
    cin = x_bf16.shape[1]
    cout = w_bf16.shape[1]
    kernel = functools.partial(_fused_layer_kernel, tk=tk,
                               apply_relu=apply_relu)
    return pl.pallas_call(
        kernel,
        out_shape=jax.ShapeDtypeStruct((n, cout), out_dtype),
        grid=(n // tm, n // tk),                             # rows, K reduction
        in_specs=[
            pl.BlockSpec((tm, tk), lambda i, k: (i, k)),     # A_hat tile (stream)
            pl.BlockSpec((n, cin), lambda i, k: (0, 0)),     # full X (resident)
            pl.BlockSpec((cin, cout), lambda i, k: (0, 0)),  # full W (resident)
            pl.BlockSpec((1, cout), lambda i, k: (0, 0)),    # bias (lane-dense)
        ],
        out_specs=pl.BlockSpec((tm, cout), lambda i, k: (i, 0)),
        scratch_shapes=[pltpu.VMEM((tm, cout), jnp.float32)],
        compiler_params=pltpu.CompilerParams(
            dimension_semantics=("parallel", "arbitrary"),
            vmem_limit_bytes=vmem_limit),
    )(a_bf16, x_bf16, w_bf16, b_f32)


# --------------------------------------------------------------------------
# Fallback kernel 1: feature transform  H = X @ W  (K-tiled over cin)
# --------------------------------------------------------------------------
def _xw_kernel(x_ref, w_ref, h_ref, acc_ref):
    k = pl.program_id(1)

    @pl.when(k == 0)
    def _():
        acc_ref[...] = jnp.zeros_like(acc_ref)

    acc_ref[...] += jnp.dot(x_ref[...], w_ref[...],
                            preferred_element_type=jnp.float32)

    @pl.when(k == pl.num_programs(1) - 1)
    def _():
        h_ref[...] = acc_ref[...].astype(h_ref.dtype)


def feature_transform(x_bf16, w_bf16, *, tm, tkc, vmem_limit):
    n, cin = x_bf16.shape
    cout = w_bf16.shape[1]
    return pl.pallas_call(
        _xw_kernel,
        out_shape=jax.ShapeDtypeStruct((n, cout), jnp.bfloat16),
        grid=(n // tm, cin // tkc),
        in_specs=[
            pl.BlockSpec((tm, tkc), lambda i, k: (i, k)),
            pl.BlockSpec((tkc, cout), lambda i, k: (k, 0)),
        ],
        out_specs=pl.BlockSpec((tm, cout), lambda i, k: (i, 0)),
        scratch_shapes=[pltpu.VMEM((tm, cout), jnp.float32)],
        compiler_params=pltpu.CompilerParams(
            dimension_semantics=("parallel", "arbitrary"),
            vmem_limit_bytes=vmem_limit),
    )(x_bf16, w_bf16)


# --------------------------------------------------------------------------
# Fallback kernel 2: aggregation  O = A_hat @ H + b
#   resident_h=True : full H resident in VMEM, K-slab sliced in-kernel
#   resident_h=False: H K-slabs streamed from HBM
# --------------------------------------------------------------------------
def _agg_resident_kernel(a_ref, h_ref, b_ref, o_ref, acc_ref, *, tk,
                         apply_relu):
    k = pl.program_id(1)

    @pl.when(k == 0)
    def _():
        acc_ref[...] = jnp.zeros_like(acc_ref)

    start = pl.multiple_of(k * tk, tk)
    acc_ref[...] += jnp.dot(a_ref[...], h_ref[pl.ds(start, tk), :],
                            preferred_element_type=jnp.float32)

    @pl.when(k == pl.num_programs(1) - 1)
    def _():
        out = acc_ref[...] + b_ref[...]
        if apply_relu:
            out = jnp.maximum(out, 0.0)
        o_ref[...] = out.astype(o_ref.dtype)


def _agg_stream_kernel(a_ref, h_ref, b_ref, o_ref, acc_ref, *, apply_relu):
    k = pl.program_id(1)

    @pl.when(k == 0)
    def _():
        acc_ref[...] = jnp.zeros_like(acc_ref)

    acc_ref[...] += jnp.dot(a_ref[...], h_ref[...],
                            preferred_element_type=jnp.float32)

    @pl.when(k == pl.num_programs(1) - 1)
    def _():
        out = acc_ref[...] + b_ref[...]
        if apply_relu:
            out = jnp.maximum(out, 0.0)
        o_ref[...] = out.astype(o_ref.dtype)


def aggregate(a_bf16, h_bf16, b_f32, *, apply_relu, out_dtype, tm, tk,
              resident_h, vmem_limit):
    n = a_bf16.shape[0]
    cout = h_bf16.shape[1]
    if resident_h:
        kernel = functools.partial(_agg_resident_kernel, tk=tk,
                                   apply_relu=apply_relu)
        h_spec = pl.BlockSpec((n, cout), lambda i, k: (0, 0))    # resident H
    else:
        kernel = functools.partial(_agg_stream_kernel, apply_relu=apply_relu)
        h_spec = pl.BlockSpec((tk, cout), lambda i, k: (k, 0))   # streamed slab
    return pl.pallas_call(
        kernel,
        out_shape=jax.ShapeDtypeStruct((n, cout), out_dtype),
        grid=(n // tm, n // tk),
        in_specs=[
            pl.BlockSpec((tm, tk), lambda i, k: (i, k)),
            h_spec,
            pl.BlockSpec((1, cout), lambda i, k: (0, 0)),
        ],
        out_specs=pl.BlockSpec((tm, cout), lambda i, k: (i, 0)),
        scratch_shapes=[pltpu.VMEM((tm, cout), jnp.float32)],
        compiler_params=pltpu.CompilerParams(
            dimension_semantics=("parallel", "arbitrary"),
            vmem_limit_bytes=vmem_limit),
    )(a_bf16, h_bf16, b_f32)


# --------------------------------------------------------------------------
# Tile / mode planning against the VMEM budget
# --------------------------------------------------------------------------
def _plan_layer(n_pad, cin_pad, cout_pad, out_bytes, budget):
    """Choose (mode, tm, tk) for one layer. Prefers fused > resident H > stream."""
    tm_opts = _divisor_tiles(n_pad, (1024, 512, 256, 128))
    tk_opts = _divisor_tiles(n_pad, (2048, 1024, 512, 256, 128))
    # keep >= 2 row tiles so the "parallel" axis feeds both v7x TensorCores
    tm_mc = [t for t in tm_opts if n_pad // t >= 2] or tm_opts

    def fused_bytes(tm, tk):
        return (2 * tm * tk * 2            # A tiles (bf16, double-buffered)
                + 2 * n_pad * cin_pad * 2  # resident X (conservative 2x)
                + 2 * cin_pad * cout_pad * 2
                + tm * cout_pad * 4        # f32 accumulator
                + 2 * tm * cout_pad * out_bytes
                + 2 * cout_pad * 4)

    def resident_bytes(tm, tk):
        return (2 * tm * tk * 2
                + 2 * n_pad * cout_pad * 2   # resident H (conservative 2x)
                + tm * cout_pad * 4
                + 2 * tm * cout_pad * out_bytes
                + 2 * cout_pad * 4)

    def stream_bytes(tm, tk):
        return (2 * tm * tk * 2
                + 2 * tk * cout_pad * 2      # streamed H slab
                + tm * cout_pad * 4
                + 2 * tm * cout_pad * out_bytes
                + 2 * cout_pad * 4)

    for mode, estimator in (("fused", fused_bytes),
                            ("resident_h", resident_bytes),
                            ("stream_h", stream_bytes)):
        for tm in tm_mc:
            for tk in tk_opts:
                if estimator(tm, tk) <= budget:
                    return mode, tm, tk
    return "stream_h", 128, 128


def _plan_xw(n_pad, cin_pad, cout_pad, budget):
    tm_opts = _divisor_tiles(n_pad, (1024, 512, 256, 128))
    tm_mc = [t for t in tm_opts if n_pad // t >= 2] or tm_opts
    tk_opts = _divisor_tiles(cin_pad, (2048, 1024, 512, 256, 128))
    for tm in tm_mc:
        for tk in tk_opts:
            need = (2 * tm * tk * 2 + 2 * tk * cout_pad * 2
                    + tm * cout_pad * 4 + 2 * tm * cout_pad * 2)
            if need <= budget:
                return tm, tk
    return 128, 128


# --------------------------------------------------------------------------
# Plain-JAX glue: normalized adjacency, parameter init, padding, forward
# --------------------------------------------------------------------------
def build_normalized_adjacency(edge_index, num_nodes):
    """Dense D^{-1/2}(A+I)D^{-1/2} from a (2, E) int edge_index."""
    src, dst = edge_index[0], edge_index[1]
    a = jnp.zeros((num_nodes, num_nodes), jnp.float32)
    a = a.at[dst, src].add(1.0)                           # message j -> i
    a = a + jnp.eye(num_nodes, dtype=jnp.float32)         # self loops
    deg = jnp.sum(a, axis=1)
    dinv = jnp.where(deg > 0, 1.0 / jnp.sqrt(deg), 0.0)
    return dinv[:, None] * a * dinv[None, :]


def init_gcn_params(key, in_channels, hidden_channels, out_channels, num_layers):
    """Glorot-uniform weights, zero bias (PyG GCNConv defaults), deterministic."""
    dims = [in_channels] + [hidden_channels] * (num_layers - 1) + [out_channels]
    params = []
    for li in range(num_layers):
        key, wk = jax.random.split(key)
        cin, cout = dims[li], dims[li + 1]
        limit = jnp.sqrt(6.0 / (cin + cout))
        w = jax.random.uniform(wk, (cin, cout), jnp.float32, -limit, limit)
        b = jnp.zeros((1, cout), jnp.float32)
        params.append((w, b))
    return params


def gcn_forward(x, edge_index, params):
    num_nodes, in_channels = x.shape
    a_hat = build_normalized_adjacency(edge_index, num_nodes)

    n_pad = _round_up(max(num_nodes, LANE), LANE)
    a_pad = jnp.zeros((n_pad, n_pad), jnp.bfloat16)
    a_pad = a_pad.at[:num_nodes, :num_nodes].set(a_hat.astype(jnp.bfloat16))

    cin_pad = _round_up(in_channels, LANE)
    h = jnp.zeros((n_pad, cin_pad), jnp.bfloat16)
    h = h.at[:num_nodes, :in_channels].set(x.astype(jnp.bfloat16))

    vmem_limit = _vmem_limit_bytes()
    budget = (vmem_limit * 3) // 5     # headroom for compiler-internal scratch

    num_layers = len(params)
    for li, (w, b) in enumerate(params):
        last = li == num_layers - 1
        cin_l, cout_l = w.shape
        cin_l_pad = _round_up(cin_l, LANE)
        cout_l_pad = _round_up(cout_l, LANE)
        assert h.shape[1] == cin_l_pad

        w_pad = jnp.zeros((cin_l_pad, cout_l_pad), jnp.bfloat16)
        w_pad = w_pad.at[:cin_l, :cout_l].set(w.astype(jnp.bfloat16))
        b_pad = jnp.zeros((1, cout_l_pad), jnp.float32)
        b_pad = b_pad.at[:, :cout_l].set(b)

        out_dtype = jnp.float32 if last else jnp.bfloat16
        out_bytes = jnp.dtype(out_dtype).itemsize
        mode, tm, tk = _plan_layer(n_pad, cin_l_pad, cout_l_pad, out_bytes,
                                   budget)

        if mode == "fused":
            h = fused_layer(a_pad, h, w_pad, b_pad, apply_relu=not last,
                            out_dtype=out_dtype, tm=tm, tk=tk,
                            vmem_limit=vmem_limit)
        else:
            tm_f, tk_f = _plan_xw(n_pad, cin_l_pad, cout_l_pad, budget)
            xw = feature_transform(h, w_pad, tm=tm_f, tkc=tk_f,
                                   vmem_limit=vmem_limit)
            h = aggregate(a_pad, xw, b_pad, apply_relu=not last,
                          out_dtype=out_dtype, tm=tm, tk=tk,
                          resident_h=(mode == "resident_h"),
                          vmem_limit=vmem_limit)
        # F.dropout(p=0.5, training=self.training) is the identity at inference.
        # TODO(synk): training-mode dropout (p=0.5) not implemented.

    out_channels = params[-1][0].shape[1]
    return h[:num_nodes, :out_channels]


def gcn_forward_reference(x, edge_index, params):
    """Pure-JAX f32 reference for tolerance validation."""
    a_hat = build_normalized_adjacency(edge_index, x.shape[0])
    h = x
    for li, (w, b) in enumerate(params):
        h = a_hat @ (h @ w) + b
        if li != len(params) - 1:
            h = jnp.maximum(h, 0.0)
    return h


if __name__ == "__main__":
    key = jax.random.PRNGKey(0)

    # Small shapes consistent with the module's forward.
    num_nodes = 64
    num_edges = 256
    in_channels, hidden_channels, out_channels, num_layers = 16, 32, 8, 3

    k_x, k_e, k_p = jax.random.split(key, 3)
    x = jax.random.normal(k_x, (num_nodes, in_channels), jnp.float32)
    edge_index = jax.random.randint(k_e, (2, num_edges), 0, num_nodes, jnp.int32)

    params = init_gcn_params(k_p, in_channels, hidden_channels,
                             out_channels, num_layers)

    out = gcn_forward(x, edge_index, params)
    out = jax.block_until_ready(out)
    assert out.shape == (num_nodes, out_channels)

    # bf16 matmul operands -> validate against f32 reference with tolerance.
    ref = gcn_forward_reference(x, edge_index, params)
    rel = jnp.linalg.norm(out - ref) / (jnp.linalg.norm(ref) + 1e-6)
    assert float(rel) < 0.08, f"relative error too large: {float(rel)}"

    print("KERNEL_OK")
</pallas_src>

<mosaic_0001>
module attributes {stable_mosaic.version = 11 : i64} {
  func.func @_fused_layer_kernel(%arg0: i32, %arg1: i32, %arg2: memref<128x128xbf16, #tpu.memory_space<vmem>>, %arg3: memref<128x128xbf16, #tpu.memory_space<vmem>>, %arg4: memref<128x128xbf16, #tpu.memory_space<vmem>>, %arg5: memref<1x128xf32, #tpu.memory_space<vmem>>, %arg6: memref<128x128xbf16, #tpu.memory_space<vmem>>, %arg7: memref<128x128xf32, #tpu.memory_space<vmem>>) attributes {dimension_semantics = [#tpu.dimension_semantics<parallel>, #tpu.dimension_semantics<arbitrary>], iteration_bounds = array<i64: 1, 1>, scalar_prefetch = 0 : i64, scratch_operands = 1 : i64, tpu.core_type = #tpu.core_type<tc>, window_params = [{transform_indices = @transform_0, window_bounds = array<i64: 128, 128>}, {pipeline_mode = #tpu.pipeline_mode<synchronous>, transform_indices = @transform_1, window_bounds = array<i64: 128, 128>}, {pipeline_mode = #tpu.pipeline_mode<synchronous>, transform_indices = @transform_2, window_bounds = array<i64: 128, 128>}, {pipeline_mode = #tpu.pipeline_mode<synchronous>, transform_indices = @transform_3, window_bounds = array<i64: 1, 128>}, {transform_indices = @transform_4, window_bounds = array<i64: 128, 128>}]} {
    %c0_i32 = arith.constant 0 : i32
    %0 = arith.cmpi eq, %arg1, %c0_i32 : i32
    %1 = arith.extui %0 : i1 to i32
    %c0_i32_0 = arith.constant 0 : i32
    %2 = arith.cmpi ne, %1, %c0_i32_0 : i32
    scf.if %2 {
      %cst_12 = arith.constant 0.000000e+00 : f32
      %18 = vector.broadcast %cst_12 : f32 to vector<128x128xf32>
      %c0_13 = arith.constant 0 : index
      %c0_14 = arith.constant 0 : index
      %19 = vector.load %arg7[%c0_13, %c0_14] : memref<128x128xf32, #tpu.memory_space<vmem>>, vector<128x128xf32>
      tpu.vector_store %arg7[%c0_13, %c0_14], %18 {strides = array<i32>} : memref<128x128xf32, #tpu.memory_space<vmem>>, vector<128x128xf32>,
    } else {
    }
    %c128_i32 = arith.constant 128 : i32
    %3 = arith.muli %arg1, %c128_i32 : i32
    %4 = tpu.assume_multiple %3, 128 : i32
    %5 = arith.index_cast %4 : i32 to index
    %c0 = arith.constant 0 : index
    %6 = vector.load %arg3[%5, %c0] : memref<128x128xbf16, #tpu.memory_space<vmem>>, vector<128x128xbf16>
    %c0_1 = arith.constant 0 : index
    %c0_2 = arith.constant 0 : index
    %7 = vector.load %arg4[%c0_1, %c0_2] : memref<128x128xbf16, #tpu.memory_space<vmem>>, vector<128x128xbf16>
    %cst = arith.constant dense<0.000000e+00> : vector<128x128xf32>
    %8 = tpu.matmul %6, %7, %cst {dimension_numbers = #tpu.dot_dimension_numbers<[1], [0], [0], [1], [0, 0, 1, 1], [], []>} : vector<128x128xbf16>, vector<128x128xbf16>, vector<128x128xf32> -> vector<128x128xf32>
    %9 = arith.truncf %8 : vector<128x128xf32> to vector<128x128xbf16>
    %c0_3 = arith.constant 0 : index
    %c0_4 = arith.constant 0 : index
    %10 = vector.load %arg7[%c0_3, %c0_4] : memref<128x128xf32, #tpu.memory_space<vmem>>, vector<128x128xf32>
    %c0_5 = arith.constant 0 : index
    %c0_6 = arith.constant 0 : index
    %11 = vector.load %arg2[%c0_5, %c0_6] : memref<128x128xbf16, #tpu.memory_space<vmem>>, vector<128x128xbf16>
    %cst_7 = arith.constant dense<0.000000e+00> : vector<128x128xf32>
    %12 = tpu.matmul %11, %9, %cst_7 {dimension_numbers = #tpu.dot_dimension_numbers<[1], [0], [0], [1], [0, 0, 1, 1], [], []>} : vector<128x128xbf16>, vector<128x128xbf16>, vector<128x128xf32> -> vector<128x128xf32>
    %13 = arith.addf %10, %12 : vector<128x128xf32>
    %c0_8 = arith.constant 0 : index
    %c0_9 = arith.constant 0 : index
    %14 = vector.load %arg7[%c0_8, %c0_9] : memref<128x128xf32, #tpu.memory_space<vmem>>, vector<128x128xf32>
    tpu.vector_store %arg7[%c0_8, %c0_9], %13 {strides = array<i32>} : memref<128x128xf32, #tpu.memory_space<vmem>>, vector<128x128xf32>,
    %c0_i32_10 = arith.constant 0 : i32
    %15 = arith.cmpi eq, %arg1, %c0_i32_10 : i32
    %16 = arith.extui %15 : i1 to i32
    %c0_i32_11 = arith.constant 0 : i32
    %17 = arith.cmpi ne, %16, %c0_i32_11 : i32
    scf.if %17 {
      %c0_12 = arith.constant 0 : index
      %c0_13 = arith.constant 0 : index
      %18 = vector.load %arg7[%c0_12, %c0_13] : memref<128x128xf32, #tpu.memory_space<vmem>>, vector<128x128xf32>
      %c0_14 = arith.constant 0 : index
      %c0_15 = arith.constant 0 : index
      %19 = vector.load %arg5[%c0_14, %c0_15] : memref<1x128xf32, #tpu.memory_space<vmem>>, vector<1x128xf32>
      %20 = vector.broadcast %19 : vector<1x128xf32> to vector<128x128xf32>
      %21 = arith.addf %18, %20 : vector<128x128xf32>
      %cst_16 = arith.constant 0.000000e+00 : f32
      %22 = vector.broadcast %cst_16 : f32 to vector<128x128xf32>
      %23 = arith.maximumf %21, %22 : vector<128x128xf32>
      %24 = arith.truncf %23 : vector<128x128xf32> to vector<128x128xbf16>
      %c0_17 = arith.constant 0 : index
      %c0_18 = arith.constant 0 : index
      %25 = vector.load %arg6[%c0_17, %c0_18] : memref<128x128xbf16, #tpu.memory_space<vmem>>, vector<128x128xbf16>
      tpu.vector_store %arg6[%c0_17, %c0_18], %24 {strides = array<i32>} : memref<128x128xbf16, #tpu.memory_space<vmem>>, vector<128x128xbf16>,
    } else {
    }
    return
  }
  func.func @transform_0(%arg0: i32, %arg1: i32) -> (i32, i32) {
    %c0_i32 = arith.constant 0 : i32
    return %arg0, %arg1 : i32, i32
  }
  func.func @transform_1(%arg0: i32, %arg1: i32) -> (i32, i32) {
    %c0_i32 = arith.constant 0 : i32
    %c0_i32_0 = arith.constant 0 : i32
    %c0_i32_1 = arith.constant 0 : i32
    return %c0_i32, %c0_i32_0 : i32, i32
  }
  func.func @transform_2(%arg0: i32, %arg1: i32) -> (i32, i32) {
    %c0_i32 = arith.constant 0 : i32
    %c0_i32_0 = arith.constant 0 : i32
    %c0_i32_1 = arith.constant 0 : i32
    return %c0_i32, %c0_i32_0 : i32, i32
  }
  func.func @transform_3(%arg0: i32, %arg1: i32) -> (i32, i32) {
    %c0_i32 = arith.constant 0 : i32
    %c0_i32_0 = arith.constant 0 : i32
    %c0_i32_1 = arith.constant 0 : i32
    return %c0_i32, %c0_i32_0 : i32, i32
  }
  func.func @transform_4(%arg0: i32, %arg1: i32) -> (i32, i32) {
    %c0_i32 = arith.constant 0 : i32
    %c0_i32_0 = arith.constant 0 : i32
    return %arg0, %c0_i32 : i32, i32
  }
}

</mosaic_0001>

<bundles_post_ra>
// kernel: tpu_custom_call.1
= control target key start
LH: loop header
LB: loop body
LE: loop exit
PB: predicated region body
PF: predicated region fallthrough
CT: control target
= control target key end

     0   :  { %9 = vsyncpa [#allocation4], 0  ;;  %s1059_s0 = inlined_call_operand.hbm [shape: bf16[128,128], index: 0, kind: input, shape index: {}]   ;;  %s1060_s1 = inlined_call_operand.hbm [shape: bf16[128,128], index: 1, kind: input, shape index: {}]   ;;  %s1061_s2 = inlined_call_operand.hbm [shape: bf16[128,128], index: 2, kind: input, shape index: {}]   ;;  %s1062_s3 = inlined_call_operand.vmem [shape: f32[1,128], index: 3, kind: input, shape index: {}]   ;;  %s1063_s4 = inlined_call_operand.hbm [shape: bf16[128,128], index: 4, kind: output, shape index: {}]  }
   0x1   :  { %10 = vsyncpa [#allocation7], 0 }
   0x2   :  { %11 = vsyncpa [#allocation5], 0  ;;  %s1001_s15 = smov [#allocation6]   ;;  %s1002_s17 = smov [#allocation3]  }
   0x3   :  { %s29_s16 = sshll.u32 %s1001_s15, 4  ;;  %s17_s18 = sshll.u32 %s1002_s17, 4  ;;  %s30_s16 = int_to_ptr.vmem [resolvable:$true] %s29_s16  ;;  %s18_s18 = int_to_ptr.vmem [resolvable:$true] %s17_s18 }
   0x4   :  { %s923_s19 = scalar_lea.vmem %s30_s16, 1024  ;;  %p928_p1 = scmp.lt.s32.totalorder %s30_s16, %s30_s16 }
   0x5   :  { %p924_p0 = scmp.ne.s32.totalorder %s30_s16, %s923_s19  ;;  %p929_p2 = scmp.lt.s32.totalorder %s923_s19, %s923_s19 }
   0x7   :  { %p930_p3 = por %p929_p2, %p928_p1 }
   0x9   :  { %p931_p4 = pnand %p930_p3, %p924_p0 }
   0xb   :  { %934 = shalt.err (!%p931_p4)
}
   0xc   :  { %s1003_s20 = smov 64   ;;  %s1004_s21 = smov 4  }
   0xd   :  { %35 = dma.hbm_to_vmem [thread:$0]  %s1060_s1, 1024, %s30_s16, [#allocation7], %s1003_s20, %s1003_s20, %s1004_s21  }
   0xe   :  { %s943_s24 = scalar_lea.vmem %s18_s18, 1024  ;;  %p948_p6 = scmp.lt.s32.totalorder %s18_s18, %s18_s18 }
   0xf   :  { %p944_p5 = scmp.ne.s32.totalorder %s18_s18, %s943_s24  ;;  %p949_p7 = scmp.lt.s32.totalorder %s943_s24, %s943_s24 }
  0x11   :  { %p950_p8 = por %p949_p7, %p948_p6 }
  0x13   :  { %p951_p9 = pnand %p950_p8, %p944_p5 }
  0x15   :  { %954 = shalt.err (!%p951_p9)
}
  0x16   :  { %23 = dma.hbm_to_vmem [thread:$0]  %s1059_s0, 1024, %s18_s18, [#allocation4], %s1003_s20, %s1003_s20, %s1004_s21  }
  0x17   :  { %s1005_s27 = smov [#allocation8]  }
  0x18   :  { %s41_s28 = sshll.u32 %s1005_s27, 4  ;;  %s42_s28 = int_to_ptr.vmem [resolvable:$true] %s41_s28 }
  0x19   :  { %s963_s29 = scalar_lea.vmem %s42_s28, 1024  ;;  %p968_p11 = scmp.lt.s32.totalorder %s42_s28, %s42_s28 }
  0x1a   :  { %p964_p10 = scmp.ne.s32.totalorder %s42_s28, %s963_s29  ;;  %p969_p12 = scmp.lt.s32.totalorder %s963_s29, %s963_s29 }
  0x1c   :  { %p970_p13 = por %p969_p12, %p968_p11 }
  0x1e   :  { %p971_p0 = pnand %p970_p13, %p964_p10 }
  0x20   :  { %974 = shalt.err (!%p971_p0)
}
  0x21   :  { %47 = dma.hbm_to_vmem [thread:$0]  %s1061_s2, 1024, %s42_s28, [#allocation7], %s1003_s20, %s1003_s20, %s1004_s21  }
  0x22   :  { %995 = dma.done.wait [#allocation4], 1024  }
  0x23   :  { %996 = vsyncadd [#allocation4], 4294966272 }
  0x24   :  { %997 = dma.done.wait [#allocation7], 2048  }
  0x25   :  { %998 = vsyncadd [#allocation7], 4294965248  ;;  %v891_v0 = vld [vmem:[#allocation8 + $0x38] sm:$0xff]   ;;  %v892_v1 = vld [vmem:[#allocation8 + $0x30] sm:$0xff]  }
  0x26   :  { %821 = vmatprep.subr.bf16.mxu0 %v891_v0  ;;  %v893_v2 = vld [vmem:[#allocation8 + $0x28] sm:$0xff]   ;;  %v894_v3 = vld [vmem:[#allocation8 + $0x20] sm:$0xff]   ;;  %v895_v5 = vld [vmem:[#allocation8 + $0x18] sm:$0xff]  }
  0x27   :  { %822 = vmatpush3.bf16.msra.mxu0 %v891_v0  ;;  %v899_v4 = vld [vmem:[#allocation6] sm:$0xff]   ;;  %v896_v6 = vld [vmem:[#allocation8 + $0x10] sm:$0xff]   ;;  %v897_v7 = vld [vmem:[#allocation8 + $0x8] sm:$0xff]  }
  0x28   :  { %823 = vmatprep.subr.bf16.mxu0 %v892_v1  ;;  %837 = vmatprep.mubr.bf16.mxu0 %v899_v4  ;;  %v898_v8 = vld [vmem:[#allocation8] sm:$0xff]   ;;  %v900_v9 = vld [vmem:[#allocation6 + $0x8] sm:$0xff]   ;;  %v901_v10 = vld [vmem:[#allocation6 + $0x10] sm:$0xff]  }
  0x29   :  { %v902_v11 = vld [vmem:[#allocation6 + $0x18] sm:$0xff]   ;;  %v903_v12 = vld [vmem:[#allocation6 + $0x20] sm:$0xff]   ;;  %v904_v13 = vld [vmem:[#allocation6 + $0x28] sm:$0xff]  }
  0x2a   :  { %v905_v14 = vld [vmem:[#allocation6 + $0x30] sm:$0xff]   ;;  %v906_v15 = vld [vmem:[#allocation6 + $0x38] sm:$0xff]   ;;  %v907_v16 = vld [vmem:[#allocation3] sm:$0xff]  }
  0x2b   :  { %824 = vmatpush3.bf16.msra.mxu0 %v892_v1  ;;  %869 = vmatprep.mubr.bf16.mxu1 %v907_v16  ;;  %v908_v41 = vld [vmem:[#allocation3 + $0x8] sm:$0xff]   ;;  %v909_v42 = vld [vmem:[#allocation3 + $0x10] sm:$0xff]   ;;  %v910_v43 = vld [vmem:[#allocation3 + $0x18] sm:$0xff]  }
  0x2c   :  { %825 = vmatprep.subr.bf16.mxu0 %v893_v2  ;;  %v911_v44 = vld [vmem:[#allocation3 + $0x20] sm:$0xff]   ;;  %v912_v45 = vld [vmem:[#allocation3 + $0x28] sm:$0xff]   ;;  %v913_v46 = vld [vmem:[#allocation3 + $0x30] sm:$0xff]  }
  0x2d   :  { %v914_v47 = vld [vmem:[#allocation3 + $0x38] sm:$0xff]   ;;  %v709_v49 = vld [vmem:[%s1062_s3] ss:$0 sm:$0xff]  ;;  %s1006_s3 = smov [#allocation9]  }
  0x2e   :  { %s670_s5 = sshll.u32 %s1006_s3, 4  ;;  %s671_s5 = int_to_ptr.vmem [resolvable:$true] %s670_s5 }
  0x2f   :  { %826 = vmatpush3.bf16.msra.mxu0 %v893_v2  ;;  %s975_s6 = scalar_lea.vmem %s671_s5, 1024  ;;  %p980_p2 = scmp.lt.s32.totalorder %s671_s5, %s671_s5 }
  0x30   :  { %827 = vmatprep.subr.bf16.mxu0 %v894_v3  ;;  %p976_p1 = scmp.ne.s32.totalorder %s671_s5, %s975_s6  ;;  %p981_p3 = scmp.lt.s32.totalorder %s975_s6, %s975_s6 }
  0x32   :  { %p982_p4 = por %p981_p3, %p980_p2 }
  0x33   :  { %828 = vmatpush3.bf16.msra.mxu0 %v894_v3 }
  0x34   :  { %829 = vmatprep.subr.bf16.mxu0 %v895_v5  ;;  %p983_p5 = pnand %p982_p4, %p976_p1 }
  0x37   :  { %830 = vmatpush3.bf16.msra.mxu0 %v895_v5 }
  0x38   :  { %831 = vmatprep.subr.bf16.mxu0 %v896_v6 }
  0x3b   :  { %832 = vmatpush3.bf16.msra.mxu0 %v896_v6 }
  0x3c   :  { %833 = vmatprep.subr.bf16.mxu0 %v897_v7 }
  0x3f   :  { %834 = vmatpush3.bf16.msra.mxu0 %v897_v7 }
  0x40   :  { %835 = vmatprep.subr.bf16.mxu0 %v898_v8 }
  0x43   :  { %836 = vmatpush3.bf16.msra.mxu0 %v898_v8 }
  0x46   :  { %838 = vmatmul.mubr.bf16.vlgmr.msra.gmra.mxu0 %v900_v9 }
  0x47   :  { %841 = vmatprep.mubr.bf16.mxu0 %v901_v10 }
  0x4e   :  { %842 = vmatmul.mubr.bf16.gmra.mxu0 %v902_v11 }
  0x4f   :  { %845 = vmatprep.mubr.bf16.mxu0 %v903_v12 }
  0x56   :  { %846 = vmatmul.mubr.bf16.gmra.mxu0 %v904_v13 }
  0x57   :  { %849 = vmatprep.mubr.bf16.mxu0 %v905_v14 }
  0x5e   :  { %850 = vmatmul.mubr.bf16.gmra.mxu0 %v906_v15 }
 0x106   :  { %v839_v17 = vpop.f32.mrf.mxu0 }
 0x108   :  { %v247_v18 = vpop.f32.mrf.mxu0 }
 0x10a   :  { %v840_v19 = vpop.f32.mrf.mxu0 }
 0x10b   :  { %v311_v39 = vpack.c.bf16 %v840_v19, %v839_v17 }
 0x10c   :  { %v250_v20 = vpop.f32.mrf.mxu0 }
 0x10d   :  { %v310_v40 = vpack.c.bf16 %v250_v20, %v247_v18 }
 0x10e   :  { %v843_v21 = vpop.f32.mrf.mxu0 }
 0x110   :  { %v263_v22 = vpop.f32.mrf.mxu0 }
 0x112   :  { %v844_v23 = vpop.f32.mrf.mxu0 }
 0x113   :  { %v313_v37 = vpack.c.bf16 %v844_v23, %v843_v21 }
 0x114   :  { %v266_v24 = vpop.f32.mrf.mxu0 }
 0x115   :  { %v312_v38 = vpack.c.bf16 %v266_v24, %v263_v22 }
 0x116   :  { %v847_v25 = vpop.f32.mrf.mxu0 }
 0x118   :  { %v279_v26 = vpop.f32.mrf.mxu0 }
 0x11a   :  { %v848_v27 = vpop.f32.mrf.mxu0 }
 0x11b   :  { %v315_v35 = vpack.c.bf16 %v848_v27, %v847_v25 }
 0x11c   :  { %v282_v28 = vpop.f32.mrf.mxu0 }
 0x11d   :  { %v314_v36 = vpack.c.bf16 %v282_v28, %v279_v26 }
 0x11e   :  { %v851_v29 = vpop.f32.mrf.mxu0 }
 0x120   :  { %v295_v30 = vpop.f32.mrf.mxu0 }
 0x122   :  { %v852_v31 = vpop.f32.mrf.mxu0 }
 0x123   :  { %v317_v32 = vpack.c.bf16 %v852_v31, %v851_v29 }
 0x124   :  { %v298_v33 = vpop.f32.mrf.mxu0 }
 0x125   :  { %v316_v34 = vpack.c.bf16 %v298_v33, %v295_v30  ;;  %853 = vmatprep.subr.bf16.mxu1 %v317_v32 }
 0x126   :  { %854 = vmatpush3.bf16.msra.mxu1 %v317_v32 }
 0x127   :  { %855 = vmatprep.subr.bf16.mxu1 %v316_v34 }
 0x12a   :  { %856 = vmatpush3.bf16.msra.mxu1 %v316_v34 }
 0x12b   :  { %857 = vmatprep.subr.bf16.mxu1 %v315_v35 }
 0x12e   :  { %858 = vmatpush3.bf16.msra.mxu1 %v315_v35 }
 0x12f   :  { %859 = vmatprep.subr.bf16.mxu1 %v314_v36 }
 0x132   :  { %860 = vmatpush3.bf16.msra.mxu1 %v314_v36 }
 0x133   :  { %861 = vmatprep.subr.bf16.mxu1 %v313_v37 }
 0x136   :  { %862 = vmatpush3.bf16.msra.mxu1 %v313_v37 }
 0x137   :  { %863 = vmatprep.subr.bf16.mxu1 %v312_v38 }
 0x13a   :  { %864 = vmatpush3.bf16.msra.mxu1 %v312_v38 }
 0x13b   :  { %865 = vmatprep.subr.bf16.mxu1 %v311_v39 }
 0x13e   :  { %866 = vmatpush3.bf16.msra.mxu1 %v311_v39 }
 0x13f   :  { %867 = vmatprep.subr.bf16.mxu1 %v310_v40 }
 0x142   :  { %868 = vmatpush3.bf16.msra.mxu1 %v310_v40 }
 0x145   :  { %870 = vmatmul.mubr.bf16.vlgmr.msra.gmra.mxu1 %v908_v41 }
 0x146   :  { %873 = vmatprep.mubr.bf16.mxu1 %v909_v42 }
 0x14d   :  { %874 = vmatmul.mubr.bf16.gmra.mxu1 %v910_v43 }
 0x14e   :  { %877 = vmatprep.mubr.bf16.mxu1 %v911_v44 }
 0x155   :  { %878 = vmatmul.mubr.bf16.gmra.mxu1 %v912_v45 }
 0x156   :  { %881 = vmatprep.mubr.bf16.mxu1 %v913_v46 }
 0x15d   :  { %882 = vmatmul.mubr.bf16.gmra.mxu1 %v914_v47 }
 0x205   :  { %v871_v48 = vpop.f32.mrf.mxu1 }
 0x206   :  { %v555_v51 = vadd.f32 %v871_v48, %v709_v49 }
 0x207   :  { %v432_v50 = vpop.f32.mrf.mxu1 }
 0x208   :  { %v553_v53 = vadd.f32 %v709_v49, %v432_v50  ;;  %v571_v56 = vmax.f32 %v555_v51, 0.0 }
 0x209   :  { %v872_v52 = vpop.f32.mrf.mxu1 }
 0x20a   :  { %v556_v54 = vadd.f32 %v872_v52, %v709_v49  ;;  %v569_v60 = vmax.f32 %v553_v53, 0.0 }
 0x20b   :  { %v435_v55 = vpop.f32.mrf.mxu1 }
 0x20c   :  { %v572_v57 = vmax.f32 %v556_v54, 0.0  ;;  %v554_v58 = vadd.f32 %v709_v49, %v435_v55 }
 0x20d   :  { %v875_v59 = vpop.f32.mrf.mxu1 }
 0x20e   :  { %v750_v61 = vpack.c.bf16 %v572_v57, %v571_v56  ;;  %v570_v62 = vmax.f32 %v554_v58, 0.0  ;;  %v559_v1 = vadd.f32 %v875_v59, %v709_v49 }
 0x20f   :  { %v448_v63 = vpop.f32.mrf.mxu1 }
 0x210   :  { %782 = vst [vmem:[#allocation9 + $0x8] sm:$0xff] %v750_v61   ;;  %v745_v0 = vpack.c.bf16 %v570_v62, %v569_v60  ;;  %v557_v3 = vadd.f32 %v709_v49, %v448_v63  ;;  %v575_v6 = vmax.f32 %v559_v1, 0.0 }
 0x211   :  { %v876_v2 = vpop.f32.mrf.mxu1 }
 0x212   :  { %746 = vst [vmem:[#allocation9] sm:$0xff] %v745_v0   ;;  %v560_v4 = vadd.f32 %v876_v2, %v709_v49  ;;  %v573_v10 = vmax.f32 %v557_v3, 0.0 }
 0x213   :  { %v451_v5 = vpop.f32.mrf.mxu1 }
 0x214   :  { %v576_v7 = vmax.f32 %v560_v4, 0.0  ;;  %v558_v8 = vadd.f32 %v709_v49, %v451_v5 }
 0x215   :  { %v879_v9 = vpop.f32.mrf.mxu1 }
 0x216   :  { %v760_v11 = vpack.c.bf16 %v576_v7, %v575_v6  ;;  %v574_v12 = vmax.f32 %v558_v8, 0.0  ;;  %v563_v15 = vadd.f32 %v879_v9, %v709_v49 }
 0x217   :  { %v464_v13 = vpop.f32.mrf.mxu1 }
 0x218   :  { %784 = vst [vmem:[#allocation9 + $0x18] sm:$0xff] %v760_v11   ;;  %v755_v14 = vpack.c.bf16 %v574_v12, %v573_v10  ;;  %v561_v17 = vadd.f32 %v709_v49, %v464_v13  ;;  %v579_v20 = vmax.f32 %v563_v15, 0.0 }
 0x219   :  { %v880_v16 = vpop.f32.mrf.mxu1 }
 0x21a   :  { %783 = vst [vmem:[#allocation9 + $0x10] sm:$0xff] %v755_v14   ;;  %v564_v18 = vadd.f32 %v880_v16, %v709_v49  ;;  %v577_v24 = vmax.f32 %v561_v17, 0.0 }
 0x21b   :  { %v467_v19 = vpop.f32.mrf.mxu1 }
 0x21c   :  { %v580_v21 = vmax.f32 %v564_v18, 0.0  ;;  %v562_v22 = vadd.f32 %v709_v49, %v467_v19 }
 0x21d   :  { %v883_v23 = vpop.f32.mrf.mxu1 }
 0x21e   :  { %v770_v25 = vpack.c.bf16 %v580_v21, %v579_v20  ;;  %v578_v26 = vmax.f32 %v562_v22, 0.0  ;;  %v567_v29 = vadd.f32 %v883_v23, %v709_v49 }
 0x21f   :  { %v480_v27 = vpop.f32.mrf.mxu1 }
 0x220   :  { %786 = vst [vmem:[#allocation9 + $0x28] sm:$0xff] %v770_v25   ;;  %v765_v28 = vpack.c.bf16 %v578_v26, %v577_v24  ;;  %v565_v31 = vadd.f32 %v709_v49, %v480_v27  ;;  %v583_v34 = vmax.f32 %v567_v29, 0.0 }
 0x221   :  { %v884_v30 = vpop.f32.mrf.mxu1 }
 0x222   :  { %785 = vst [vmem:[#allocation9 + $0x20] sm:$0xff] %v765_v28   ;;  %v568_v32 = vadd.f32 %v884_v30, %v709_v49  ;;  %v581_v37 = vmax.f32 %v565_v31, 0.0 }
 0x223   :  { %v483_v33 = vpop.f32.mrf.mxu1 }
 0x224   :  { %v584_v35 = vmax.f32 %v568_v32, 0.0  ;;  %v566_v36 = vadd.f32 %v709_v49, %v483_v33 }
 0x226   :  { %v780_v38 = vpack.c.bf16 %v584_v35, %v583_v34  ;;  %v582_v39 = vmax.f32 %v566_v36, 0.0 }
 0x228   :  { %788 = vst [vmem:[#allocation9 + $0x38] sm:$0xff] %v780_v38   ;;  %v775_v40 = vpack.c.bf16 %v582_v39, %v581_v37 }
 0x22a   :  { %787 = vst [vmem:[#allocation9 + $0x30] sm:$0xff] %v775_v40  }
 0x22b   :  { %986 = shalt.err (!%p983_p5)
}
 0x22c   :  { %676 = dma.vmem_to_hbm [thread:$0]  %s671_s5, 1024, %s1063_s4, [#allocation5], %s1003_s20, %s1003_s20, %s1004_s21  }
 0x22d   :  { %999 = dma.done.wait [#allocation5], 1024  }
 0x22e   :  { %1000 = vsyncadd [#allocation5], 4294966272 }
 0x22f   :  { %680 = vsyncpa [#allocation4], 1 }
 0x230   :  { %681 = vsyncpa [#allocation7], 1 }
 0x231   :  { %682 = vsyncpa [#allocation5], 1 }

</bundles_post_ra>
